<compile_context>
chip_gen: v7x
topology: tpu7x:2x2x1
jax: 0.10.0
libtpu: 0.0.40
codegen_flags: <defaults>
</compile_context>

<pallas_src>
import functools

import jax
import jax.numpy as jnp
from jax.experimental import pallas as pl
from jax.experimental.pallas import tpu as pltpu


# ----------------------------------------------------------------------------
# Kernels
# ----------------------------------------------------------------------------
def _bcast_gemv_kernel(v_ref, x_ref, o_ref):
    # v_ref: (1, K)   broadcast vector (same block every grid step -> resident)
    # x_ref: (TM, K)  row tile of the flattened x2 (last tile may hold garbage
    #                 rows beyond R; they only feed output columns that are
    #                 clipped on the output DMA, so they are harmless)
    # o_ref: (1, TM)  lane-dense output slab
    acc = jax.lax.dot_general(
        v_ref[...], x_ref[...],
        dimension_numbers=(((1,), (1,)), ((), ())),   # contract over K
        preferred_element_type=jnp.float32,
    )                                                  # (1, TM) f32
    o_ref[...] = acc.astype(o_ref.dtype)


def _bcast_gemv_ktiled_kernel(v_ref, x_ref, o_ref, acc_ref, *, k_total, tk,
                              mask_k):
    # K-tiled fallback for huge K: grid = (row tiles, K tiles), K axis is the
    # (arbitrary) reduction axis; f32 accumulator lives in VMEM scratch.
    kk = pl.program_id(1)

    @pl.when(kk == 0)
    def _():
        acc_ref[...] = jnp.zeros_like(acc_ref)

    v = v_ref[...]            # (1, tk)
    x = x_ref[...]            # (TM, tk)
    if mask_k:
        # Ragged last K block: zero out-of-range columns on BOTH operands so
        # garbage (possibly NaN/Inf) VMEM never reaches the accumulator.
        col = jax.lax.broadcasted_iota(jnp.int32, (1, tk), 1) + kk * tk
        valid = col < k_total
        v = jnp.where(valid, v, jnp.zeros_like(v))
        x = jnp.where(valid, x, jnp.zeros_like(x))

    acc_ref[...] += jax.lax.dot_general(
        v, x,
        dimension_numbers=(((1,), (1,)), ((), ())),
        preferred_element_type=jnp.float32,
    )

    @pl.when(kk == pl.num_programs(1) - 1)
    def _():
        o_ref[...] = acc_ref[...].astype(o_ref.dtype)


# ----------------------------------------------------------------------------
# Per-generation VMEM budgets (<= ~48 MiB on v7x's 64 MiB/TC, up to ~96 MiB on
# v5e/v6e's 128 MiB).  Queried once at import time.
# ----------------------------------------------------------------------------
def _vmem_budgets():
    try:
        cap = int(pltpu.get_tpu_info().vmem_capacity_bytes)
    except Exception:
        cap = 64 * 1024 * 1024            # conservative (v7x per-TC) default
    vmem_limit = min(cap * 3 // 4, 96 * 1024 * 1024)
    vmem_limit = max(vmem_limit, 32 * 1024 * 1024)
    x_tile_budget = int(vmem_limit * 0.85)   # double-buffered x2 tiles
    return x_tile_budget, vmem_limit


_X_TILE_BUDGET, _VMEM_LIMIT = _vmem_budgets()


# ----------------------------------------------------------------------------
# Tile selection
# ----------------------------------------------------------------------------
def _pick_row_tile(n_rows, k, itemsize, x_budget_bytes):
    """Largest multiple-of-128 row tile whose double-buffered (TM, K) slab fits
    the budget.  Returns 0 if even TM=128 does not fit (K-tiling needed)."""
    per_row = max(1, k * itemsize)
    tm = (x_budget_bytes // (2 * per_row)) // 128 * 128
    if tm < 128:
        return 0
    r_pad = pl.cdiv(n_rows, 128) * 128
    tm = min(tm, r_pad)
    # Prefer an even grid-step count so the "parallel" axis splits evenly
    # across v7x's two TensorCores -- but never shrink below the ~512-row
    # DMA-efficiency knee.
    steps = pl.cdiv(n_rows, tm)
    if steps % 2 == 1:
        tm_even = pl.cdiv(pl.cdiv(n_rows, steps + 1), 128) * 128
        if tm_even >= 512 and pl.cdiv(n_rows, tm_even) % 2 == 0:
            tm = tm_even
    return tm


def _pick_k_tiles(n_rows, k, itemsize, x_budget_bytes):
    """Row/K tile sizes for the K-tiled fallback (only hit for very large K)."""
    r_pad = pl.cdiv(n_rows, 128) * 128
    tm = min(512, r_pad)
    tk = (x_budget_bytes // (2 * tm * itemsize)) // 128 * 128
    tk = max(tk, 128)
    tk = min(tk, pl.cdiv(k, 128) * 128)
    return tm, tk


# ----------------------------------------------------------------------------
# Forward
# ----------------------------------------------------------------------------
def _forward_impl(x1, x2, *, x_tile_budget, vmem_limit):
    """JAX/Pallas equivalent of Model.forward(x1, x2) for 3-D inputs."""
    assert x1.ndim == 3 and x2.ndim == 3, "permute(0,2,1) implies 3-D inputs"
    B, M, K = x2.shape
    assert x1.shape[-1] == K, "matmul contraction dims must match"

    out_dtype = jnp.result_type(x1.dtype, x2.dtype)
    R = B * M
    x_flat = x2.reshape(R, K)                  # (R, K) streaming operand
    v = x1[0:1, 0:1, :].reshape(1, K)          # (1, K) broadcast vector
    if v.dtype != x_flat.dtype:
        v = v.astype(x_flat.dtype)

    itemsize = jnp.dtype(x_flat.dtype).itemsize
    cost = pl.CostEstimate(
        flops=2 * R * K,
        transcendentals=0,
        bytes_accessed=(R * K + K) * itemsize + R * jnp.dtype(out_dtype).itemsize,
    )

    tm = _pick_row_tile(R, K, itemsize, x_tile_budget)
    if tm > 0:
        # Main path: whole-K row tiles, ragged last row block clipped by Pallas.
        out_flat = pl.pallas_call(
            _bcast_gemv_kernel,
            out_shape=jax.ShapeDtypeStruct((1, R), out_dtype),
            grid=(pl.cdiv(R, tm),),
            in_specs=[
                # broadcast vector: constant block index -> DMA'd once, reused
                pl.BlockSpec((1, K), lambda i: (0, 0)),
                # streaming rows of x2
                pl.BlockSpec((tm, K), lambda i: (i, 0)),
            ],
            out_specs=pl.BlockSpec((1, tm), lambda i: (0, i)),
            compiler_params=pltpu.CompilerParams(
                dimension_semantics=("parallel",),
                vmem_limit_bytes=vmem_limit,
            ),
            cost_estimate=cost,
        )(v, x_flat)
    else:
        # Fallback for huge K: tile the contraction axis with a VMEM accumulator.
        tm_f, tk = _pick_k_tiles(R, K, itemsize, x_tile_budget)
        kernel = functools.partial(
            _bcast_gemv_ktiled_kernel,
            k_total=K, tk=tk, mask_k=(K % tk != 0))
        out_flat = pl.pallas_call(
            kernel,
            out_shape=jax.ShapeDtypeStruct((1, R), out_dtype),
            grid=(pl.cdiv(R, tm_f), pl.cdiv(K, tk)),
            in_specs=[
                pl.BlockSpec((1, tk), lambda i, kk: (0, kk)),
                pl.BlockSpec((tm_f, tk), lambda i, kk: (i, kk)),
            ],
            out_specs=pl.BlockSpec((1, tm_f), lambda i, kk: (0, i)),
            scratch_shapes=[pltpu.VMEM((1, tm_f), jnp.float32)],
            compiler_params=pltpu.CompilerParams(
                dimension_semantics=("parallel", "arbitrary"),
                vmem_limit_bytes=vmem_limit,
            ),
            cost_estimate=cost,
        )(v, x_flat)

    # v4 = v3.permute(0, 2, 1): (B, 1, M) -> (B, M, 1), done as a metadata-only
    # reshape of the lane-dense (1, R) kernel output.  v5 is dead code.
    return out_flat.reshape(B, M, 1)


model_forward = jax.jit(functools.partial(
    _forward_impl, x_tile_budget=_X_TILE_BUDGET, vmem_limit=_VMEM_LIMIT))


# ----------------------------------------------------------------------------
# Self-test
# ----------------------------------------------------------------------------
def _ref_forward(x1, x2):
    v1 = x1[0:1, 0:1]                           # (1, 1, K)
    v2 = jnp.transpose(x2, (0, 2, 1))           # (B, K, M)
    v3 = jnp.matmul(v1, v2)                     # (B, 1, M)
    return jnp.transpose(v3, (0, 2, 1))         # (B, M, 1)


def _check(out, ref):
    assert out.shape == ref.shape, (out.shape, ref.shape)
    err = float(jnp.max(jnp.abs(out.astype(jnp.float32) - ref.astype(jnp.float32))))
    scale = float(jnp.max(jnp.abs(ref))) + 1e-6
    assert err / scale < 2e-2, f"mismatch: abs err {err}, rel {err / scale}"


if __name__ == "__main__":
    key = jax.random.PRNGKey(0)
    k1, k2, k3, k4 = jax.random.split(key, 4)

    # Main path: small 3-D shapes consistent with forward(); M chosen so the
    # flattened row count (800) is NOT a tile multiple (exercises the ragged
    # last block + even 2-step split).
    B, M, K = 4, 200, 128
    x1 = jax.random.normal(k1, (3, 4, K), dtype=jnp.float32)
    x2 = jax.random.normal(k2, (B, M, K), dtype=jnp.float32)
    out = jax.block_until_ready(model_forward(x1, x2))
    _check(out, _ref_forward(x1, x2))

    # Also exercise the K-tiled fallback kernel by forcing a tiny VMEM budget
    # (masked ragged K block + multi-step accumulation).
    fallback_forward = jax.jit(functools.partial(
        _forward_impl, x_tile_budget=128 * 1024, vmem_limit=32 * 1024 * 1024))
    Kf = 300
    y1 = jax.random.normal(k3, (2, 3, Kf), dtype=jnp.float32)
    y2 = jax.random.normal(k4, (B, M, Kf), dtype=jnp.float32)
    out_f = jax.block_until_ready(fallback_forward(y1, y2))
    _check(out_f, _ref_forward(y1, y2))

    print("KERNEL_OK")
</pallas_src>

<mosaic_0001>
module attributes {stable_mosaic.version = 11 : i64} {
  func.func @_bcast_gemv_kernel(%arg0: i32, %arg1: memref<1x128xf32, #tpu.memory_space<vmem>>, %arg2: memref<512x128xf32, #tpu.memory_space<vmem>>, %arg3: memref<1x512xf32, #tpu.memory_space<vmem>>) attributes {dimension_semantics = [#tpu.dimension_semantics<parallel>], iteration_bounds = array<i64: 2>, scalar_prefetch = 0 : i64, scratch_operands = 0 : i64, tpu.core_type = #tpu.core_type<tc>, window_params = [{pipeline_mode = #tpu.pipeline_mode<synchronous>, transform_indices = @transform_0, window_bounds = array<i64: 1, 128>}, {transform_indices = @transform_1, window_bounds = array<i64: 512, 128>}, {transform_indices = @transform_2, window_bounds = array<i64: 1, 512>}]} {
    %c0 = arith.constant 0 : index
    %c0_0 = arith.constant 0 : index
    %0 = vector.load %arg1[%c0, %c0_0] : memref<1x128xf32, #tpu.memory_space<vmem>>, vector<1x128xf32>
    %c0_1 = arith.constant 0 : index
    %c0_2 = arith.constant 0 : index
    %1 = vector.load %arg2[%c0_1, %c0_2] : memref<512x128xf32, #tpu.memory_space<vmem>>, vector<512x128xf32>
    %cst = arith.constant dense<0.000000e+00> : vector<1x512xf32>
    %2 = tpu.matmul %0, %1, %cst {dimension_numbers = #tpu.dot_dimension_numbers<[1], [1], [0], [0], [0, 0, 1, 0], [], []>} : vector<1x128xf32>, vector<512x128xf32>, vector<1x512xf32> -> vector<1x512xf32>
    %c0_3 = arith.constant 0 : index
    %c0_4 = arith.constant 0 : index
    %3 = vector.load %arg3[%c0_3, %c0_4] : memref<1x512xf32, #tpu.memory_space<vmem>>, vector<1x512xf32>
    tpu.vector_store %arg3[%c0_3, %c0_4], %2 {strides = array<i32>} : memref<1x512xf32, #tpu.memory_space<vmem>>, vector<1x512xf32>,
    return
  }
  func.func @transform_0(%arg0: i32) -> (i32, i32) {
    %c0_i32 = arith.constant 0 : i32
    %c0_i32_0 = arith.constant 0 : i32
    %c0_i32_1 = arith.constant 0 : i32
    return %c0_i32, %c0_i32_0 : i32, i32
  }
  func.func @transform_1(%arg0: i32) -> (i32, i32) {
    %c0_i32 = arith.constant 0 : i32
    %c0_i32_0 = arith.constant 0 : i32
    return %arg0, %c0_i32 : i32, i32
  }
  func.func @transform_2(%arg0: i32) -> (i32, i32) {
    %c0_i32 = arith.constant 0 : i32
    %c0_i32_0 = arith.constant 0 : i32
    return %c0_i32, %arg0 : i32, i32
  }
}

</mosaic_0001>

<bundles_post_ra>
// kernel: _forward_impl.1
= control target key start
LH: loop header
LB: loop body
LE: loop exit
PB: predicated region body
PF: predicated region fallthrough
CT: control target
= control target key end

     0   :  { %7 = vsyncpa [#allocation3], 0  ;;  %s2131_s0 = inlined_call_operand.vmem [shape: f32[1,128], index: 0, kind: input, shape index: {}]   ;;  %s2132_s1 = inlined_call_operand.hbm [shape: f32[800,128], index: 1, kind: input, shape index: {}]   ;;  %s2133_s2 = inlined_call_operand.vmem [shape: f32[1,800], index: 2, kind: output, shape index: {}]  }
   0x1   :  { %9 = vsyncpa [#allocation3 + $0x1], 0  ;;  %s1529_s9 = smov 0   ;;  %s1531_s10 = smov 0  }
   0x2   :  { %s1533_s11 = smov 0   ;;  %s1535_s12 = smov 0  }
   0x3 LB: > { %s1548_s13 = sadd.s32 4294967295, %s1442_s12   ;;  %s1551_s14 = sadd.s32 1, %s1442_s12   ;;  %s1442_s12 = sphi %s1535_s12, %s2149_s12   ;;  %s1438_s11 = sphi %s1533_s11, %s2148_s11   ;;  %s1434_s10 = sphi %s1531_s10, %s2147_s10   ;;  %s1430_s9 = sphi %s1529_s9, %s2146_s9  }
   0x4   : > { %s40_s15 = ssub.s32 %s1442_s12, %s1551_s14  ;;  %s43_s16 = sadd.s32 1, %s1438_s11 }
   0x5   : > { %p41_p0 = scmp.eq.s32.totalorder %s40_s15, 0  ;;  %p50_p1 = scmp.ne.s32.totalorder %s1438_s11, %s1434_s10 }
   0x6   : > { %p51_p2 = scmp.eq.s32.totalorder %s1442_s12, 0  ;;  %p56_p3 = scmp.ne.s32.totalorder %s1434_s10, %s1430_s9 }
   0x7   : > { %s1561_s17 = scalar_select %p41_p0, %s1438_s11, %s43_s16  }
   0x8   : > { %p52_p4 = por %p51_p2, %p50_p1  ;;  %p57_p5 = scmp.eq.s32.totalorder %s1548_s13, 0 }
   0x9   : > { %p80_p6 = scmp.eq.s32.totalorder %s1548_s13, 1  ;;  %p975_p9 = scmp.ge.s32.totalorder %s1442_s12, 2 }
   0xa   : > { %p1565_p7 = por %p57_p5, %p56_p3 }
   0xb   : > { %p1569_p8 = por %p80_p6, %p50_p1  ;;  %105 = sbr.rel (%p975_p9) target bundleno = 53 (0x35), region = 20 }
  0x12   : > { %108 = sbr.rel (!%p52_p4) target bundleno = 53 (0x35), region = 24  ;;  %s109_s20 = sand.u32 (%p52_p4), 1, %s1438_s11  }
  0x13   : > { %s977_s21 = sshll.u32 (%p52_p4), %s1442_s12, 6  ;;  %s976_s22 = sshll.u32 (%p52_p4), %s109_s20, 9 }
  0x14   : > { %s115_s23 = ssub.s32 (%p52_p4), 100, %s977_s21  ;;  %s1579_s26 = scalar_lea.sflag (%p52_p4), [#allocation3], %s109_s20 }
  0x15   : > { %p116_p10 = scmp.lt.s32.totalorder (%p52_p4), %s115_s23, 64  ;;  %s113_s27 = scalar_lea.vmem (%p52_p4), [#allocation2], %s976_s22 }
  0x19   : > { %s2151_s23 = smov (!%p116_p10, %s115_s23), 64 }
  0x1a   : > { %s1576_s24 = sshll.u32 %s2151_s23, 7 }
  0x1b   : > { %s120_s25 = ssub.s32 8192, %s1576_s24 }
  0x1c   : > { %121 = vsyncadd %s1579_s26, %s120_s25  ;;  %p979_p11 = scmp.ne.s32.totalorder %s1576_s24, 0  ;;  %s1013_s28 = sshll.u32 %s1442_s12, 13 }
  0x1d   : > { %s1587_s3 = scalar_lea.hbm %s2132_s1, %s1013_s28  ;;  %s126_s4 = sshll.u32 %s113_s27, 4  ;;  %s1589_s4 = int_to_ptr.vmem [resolvable:$true] %s126_s4 }
  0x1e   : > { %s1316_s5 = scalar_lea.hbm %s1587_s3, %s1576_s24  ;;  %s1320_s8 = scalar_lea.hbm %s2132_s1, 12800 }
  0x1f   : > { %p1317_p12 = scmp.ne.s32.totalorder %s1587_s3, %s1316_s5  ;;  %p1321_p1 = scmp.lt.u32.totalorder %s1587_s3, %s2132_s1 }
  0x20   : > { %p1322_p2 = scmp.lt.u32.totalorder %s1320_s8, %s1316_s5  ;;  %p1324_p4 = scmp.lt.u32.totalorder %s1316_s5, %s1587_s3 }
  0x21   : > { %p1318_p13 = pnand %p1317_p12, %p979_p11 }
  0x22   : > { %p1323_p3 = por %p1322_p2, %p1321_p1 }
  0x23   : > { %p1319_p0 = pneg %p1318_p13 }
  0x24   : > { %p1325_p5 = por %p1324_p4, %p1323_p3 }
  0x26   : > { %p1326_p6 = pnand %p1325_p5, %p1319_p0 }
  0x28   : > { %1329 = shalt.err (!%p1326_p6)
}
  0x29   : > { %s1330_s16 = scalar_lea.vmem %s1589_s4, %s1576_s24  ;;  %s1508_s20 = smov [#allocation2]  }
  0x2a   : > { %p1331_p9 = scmp.ne.s32.totalorder %s1589_s4, %s1330_s16  ;;  %s1334_s21 = sshll.u32 %s1508_s20, 4  ;;  %s1335_s21 = int_to_ptr.vmem [resolvable:$false] %s1334_s21 }
  0x2b   : > { %s1336_s22 = scalar_lea.vmem %s1335_s21, 16384  ;;  %p1337_p13 = scmp.lt.s32.totalorder %s1589_s4, %s1335_s21 }
  0x2c   : > { %p1332_p10 = pnand %p1331_p9, %p979_p11  ;;  %p1338_p1 = scmp.lt.s32.totalorder %s1336_s22, %s1330_s16 }
  0x2e   : > { %p1333_p12 = pneg %p1332_p10  ;;  %p1339_p2 = por %p1338_p1, %p1337_p13 }
  0x30   : > { %p1340_p3 = pnand %p1339_p2, %p1333_p12 }
  0x32   : > { %1343 = shalt.err (!%p1340_p3)
}
  0x33   : > { %s1509_s23 = smov 128   ;;  %s1510_s25 = smov 8  }
  0x34   : > { %132 = dma.hbm_to_vmem [thread:$0]  (%p979_p11), %s1587_s3, %s1576_s24, %s1589_s4, %s1579_s26, %s1509_s23, %s1509_s23, %s1510_s25  }
  0x35 PF: > { %p983_p0 = scmp.ge.s32.totalorder %s1442_s12, 1  ;;  %p134_p4 = scmp.lt.s32.totalorder %s1442_s12, 3 }
  0x37   : > { %p135_p5 = pnand %p983_p0, %p134_p4 }
  0x38   : > { %s1619_s27 = sand.u32 (!%p135_p5), 1, %s1434_s10  }
  0x39   : > { %138 = sbr.rel (%p135_p5) target bundleno = 521 (0x209), region = 28  ;;  %s984_s28 = sshll.u32 (!%p135_p5), %s1619_s27, 9 }
  0x3a   : > { %s141_s29 = scalar_lea.sflag (!%p135_p5), [#allocation3], %s1619_s27  ;;  %s1623_s30 = scalar_lea.vmem (!%p135_p5), [#allocation2], %s984_s28 }
  0x40   : > { %1425 = dma.done.wait (%p1565_p7), %s141_s29, 8192  }
  0x41   : > { %1427 = vsyncadd (%p1565_p7), %s141_s29, 4294959104  ;;  %v191_v0 = vld [vmem:[%s1623_s30 + $0x80] sm:$0xff]  ;;  %v192_v1 = vld [vmem:[%s1623_s30 + $0x88] sm:$0xff]  ;;  %s985_s24 = sshll.u32 %s1619_s27, 2  ;;  %s987_s3 = sshll.u32 (%p1569_p8), %s1548_s13, 2 }
  0x42   : > { %v223_v2 = vld [vmem:[%s1623_s30 + $0x180] sm:$0xff]  ;;  %v1086_v3 = vpack.c.bf16 %v192_v1, %v191_v0  ;;  %v224_v4 = vld [vmem:[%s1623_s30 + $0x188] sm:$0xff]  ;;  %v193_v11 = vld [vmem:[%s1623_s30 + $0x90] sm:$0xff]  ;;  %s1703_s26 = scalar_lea.vmem [#allocation4], %s985_s24   ;;  %s423_s4 = ssub.s32 (%p1569_p8), 7, %s987_s3 }
  0x43   : > { %v175_v5 = vld [vmem:[%s1623_s30] sm:$0xff]  ;;  %v176_v6 = vld [vmem:[%s1623_s30 + $0x8] sm:$0xff]  ;;  %v1118_v7 = vpack.c.bf16 %v224_v4, %v223_v2  ;;  %v194_v13 = vld [vmem:[%s1623_s30 + $0x98] sm:$0xff]  ;;  %s1712_s7 = scalar_lea.vmem (%p1569_p8), %s2133_s2, %s987_s3   ;;  %p424_p7 = scmp.lt.s32.totalorder (%p1569_p8), %s423_s4, 4 }
  0x44   : > { %v1088_v8 = vpack.c.bf16 %v176_v6, %v175_v5  ;;  %v207_v9 = vld [vmem:[%s1623_s30 + $0x100] sm:$0xff]  ;;  %v208_v10 = vld [vmem:[%s1623_s30 + $0x108] sm:$0xff]  ;;  %1087 = vmatprep.subr.bf16.mxu0 %v1086_v3  ;;  %v225_v14 = vld [vmem:[%s1623_s30 + $0x190] sm:$0xff]  ;;  %v1090_v16 = vpack.c.bf16 %v194_v13, %v193_v11 }
  0x45   : > { %v1120_v12 = vpack.c.bf16 %v208_v10, %v207_v9  ;;  %v226_v15 = vld [vmem:[%s1623_s30 + $0x198] sm:$0xff]  ;;  %1119 = vmatprep.subr.bf16.mxu1 %v1118_v7  ;;  %v177_v18 = vld [vmem:[%s1623_s30 + $0x10] sm:$0xff]  ;;  %v195_v22 = vld [vmem:[%s1623_s30 + $0xa0] sm:$0xff] }
  0x46   : > { %1089 = vmatpush3.bf16.xpose.msra.mxu0 %v1088_v8  ;;  %v1122_v17 = vpack.c.bf16 %v226_v15, %v225_v14  ;;  %v178_v19 = vld [vmem:[%s1623_s30 + $0x18] sm:$0xff]  ;;  %v209_v20 = vld [vmem:[%s1623_s30 + $0x110] sm:$0xff]  ;;  %v196_v23 = vld [vmem:[%s1623_s30 + $0xa8] sm:$0xff] }
  0x47   : > { %1121 = vmatpush3.bf16.xpose.msra.mxu1 %v1120_v12  ;;  %1091 = vmatprep.subr.bf16.mxu0 %v1090_v16  ;;  %v210_v21 = vld [vmem:[%s1623_s30 + $0x118] sm:$0xff]  ;;  %v227_v24 = vld [vmem:[%s1623_s30 + $0x1a0] sm:$0xff]  ;;  %v228_v25 = vld [vmem:[%s1623_s30 + $0x1a8] sm:$0xff]  ;;  %v1092_v26 = vpack.c.bf16 %v178_v19, %v177_v18  ;;  %v1094_v28 = vpack.c.bf16 %v196_v23, %v195_v22 }
  0x48   : > { %1123 = vmatprep.subr.bf16.mxu1 %v1122_v17  ;;  %v1124_v27 = vpack.c.bf16 %v210_v21, %v209_v20  ;;  %v1126_v29 = vpack.c.bf16 %v228_v25, %v227_v24  ;;  %v179_v30 = vld [vmem:[%s1623_s30 + $0x20] sm:$0xff]  ;;  %v180_v31 = vld [vmem:[%s1623_s30 + $0x28] sm:$0xff]  ;;  %v197_v34 = vld [vmem:[%s1623_s30 + $0xb0] sm:$0xff] }
  0x49   : > { %v211_v32 = vld [vmem:[%s1623_s30 + $0x120] sm:$0xff]  ;;  %v212_v33 = vld [vmem:[%s1623_s30 + $0x128] sm:$0xff]  ;;  %v198_v35 = vld [vmem:[%s1623_s30 + $0xb8] sm:$0xff]  ;;  %v1096_v38 = vpack.c.bf16 %v180_v31, %v179_v30 }
  0x4a   : > { %v229_v36 = vld [vmem:[%s1623_s30 + $0x1b0] sm:$0xff]  ;;  %v230_v37 = vld [vmem:[%s1623_s30 + $0x1b8] sm:$0xff]  ;;  %v1128_v39 = vpack.c.bf16 %v212_v33, %v211_v32  ;;  %v1098_v40 = vpack.c.bf16 %v198_v35, %v197_v34  ;;  %v1663_v45 = vld [vmem:[%s2131_s0] sm:$0x1]  ;;  %v1511_v33 = vmov 1966171168   ;;  %v390_v35 = vlaneseq }
  0x4b   : > { %v1130_v41 = vpack.c.bf16 %v230_v37, %v229_v36  ;;  %v181_v42 = vld [vmem:[%s1623_s30 + $0x30] sm:$0xff]  ;;  %v182_v43 = vld [vmem:[%s1623_s30 + $0x38] sm:$0xff]  ;;  %v199_v47 = vld [vmem:[%s1623_s30 + $0xc0] sm:$0xff]  ;;  %1050 = vmatprep.mubr.f32.mxu0 %v1663_v45  ;;  %1084 = vmatprep.mubr.f32.mxu1 %v1663_v45  ;;  %v388_v34 = vunpack.c.l.s4 %v1511_v33 }
  0x4c   : > { %v213_v44 = vld [vmem:[%s1623_s30 + $0x130] sm:$0xff]  ;;  %v214_v46 = vld [vmem:[%s1623_s30 + $0x138] sm:$0xff]  ;;  %v200_v48 = vld [vmem:[%s1623_s30 + $0xc8] sm:$0xff]  ;;  %v1100_v51 = vpack.c.bf16 %v182_v43, %v181_v42  ;;  %v391_v37 = vshrl.u32 %v390_v35, 7  ;;  %vm412_vm0 = vcmp.lt.s32.totalorder %v390_v35, 512 }
  0x4d   : > { %v231_v49 = vld [vmem:[%s1623_s30 + $0x1c0] sm:$0xff]  ;;  %v232_v50 = vld [vmem:[%s1623_s30 + $0x1c8] sm:$0xff]  ;;  %v1132_v52 = vpack.c.bf16 %v214_v46, %v213_v44  ;;  %v1102_v53 = vpack.c.bf16 %v200_v48, %v199_v47  ;;  %v201_v59 = vld [vmem:[%s1623_s30 + $0xd0] sm:$0xff]  ;;  %v389_v36 = vunpack.c.0.s8 %v388_v34 }
  0x4e   : > { %1093 = vmatpush3.bf16.xpose.msra.mxu0 %v1092_v26  ;;  %v1134_v54 = vpack.c.bf16 %v232_v50, %v231_v49  ;;  %v183_v55 = vld [vmem:[%s1623_s30 + $0x40] sm:$0xff]  ;;  %v184_v56 = vld [vmem:[%s1623_s30 + $0x48] sm:$0xff]  ;;  %v202_v60 = vld [vmem:[%s1623_s30 + $0xd8] sm:$0xff] }
  0x4f   : > { %1125 = vmatpush3.bf16.xpose.msra.mxu1 %v1124_v27  ;;  %1095 = vmatprep.subr.bf16.mxu0 %v1094_v28  ;;  %v215_v57 = vld [vmem:[%s1623_s30 + $0x140] sm:$0xff]  ;;  %v216_v58 = vld [vmem:[%s1623_s30 + $0x148] sm:$0xff]  ;;  %v233_v61 = vld [vmem:[%s1623_s30 + $0x1d0] sm:$0xff]  ;;  %v1104_v63 = vpack.c.bf16 %v184_v56, %v183_v55  ;;  %v1106_v1 = vpack.c.bf16 %v202_v60, %v201_v59 }
  0x50   : > { %1127 = vmatprep.subr.bf16.mxu1 %v1126_v29  ;;  %v234_v62 = vld [vmem:[%s1623_s30 + $0x1d8] sm:$0xff]  ;;  %v1136_v0 = vpack.c.bf16 %v216_v58, %v215_v57  ;;  %v185_v3 = vld [vmem:[%s1623_s30 + $0x50] sm:$0xff]  ;;  %v203_v7 = vld [vmem:[%s1623_s30 + $0xe0] sm:$0xff] }
  0x51   : > { %v1138_v2 = vpack.c.bf16 %v234_v62, %v233_v61  ;;  %v186_v4 = vld [vmem:[%s1623_s30 + $0x58] sm:$0xff]  ;;  %v217_v5 = vld [vmem:[%s1623_s30 + $0x150] sm:$0xff]  ;;  %v204_v8 = vld [vmem:[%s1623_s30 + $0xe8] sm:$0xff] }
  0x52   : > { %v218_v6 = vld [vmem:[%s1623_s30 + $0x158] sm:$0xff]  ;;  %v235_v9 = vld [vmem:[%s1623_s30 + $0x1e0] sm:$0xff]  ;;  %v236_v10 = vld [vmem:[%s1623_s30 + $0x1e8] sm:$0xff]  ;;  %v1108_v11 = vpack.c.bf16 %v186_v4, %v185_v3  ;;  %v1110_v13 = vpack.c.bf16 %v204_v8, %v203_v7 }
  0x53   : > { %v1140_v12 = vpack.c.bf16 %v218_v6, %v217_v5  ;;  %v1142_v14 = vpack.c.bf16 %v236_v10, %v235_v9  ;;  %v187_v15 = vld [vmem:[%s1623_s30 + $0x60] sm:$0xff]  ;;  %v188_v16 = vld [vmem:[%s1623_s30 + $0x68] sm:$0xff]  ;;  %v205_v19 = vld [vmem:[%s1623_s30 + $0xf0] sm:$0xff] }
  0x54   : > { %v219_v17 = vld [vmem:[%s1623_s30 + $0x160] sm:$0xff]  ;;  %v220_v18 = vld [vmem:[%s1623_s30 + $0x168] sm:$0xff]  ;;  %v206_v20 = vld [vmem:[%s1623_s30 + $0xf8] sm:$0xff]  ;;  %v1112_v23 = vpack.c.bf16 %v188_v16, %v187_v15 }
  0x55   : > { %v237_v21 = vld [vmem:[%s1623_s30 + $0x1f0] sm:$0xff]  ;;  %v238_v22 = vld [vmem:[%s1623_s30 + $0x1f8] sm:$0xff]  ;;  %v1144_v24 = vpack.c.bf16 %v220_v18, %v219_v17  ;;  %v1114_v25 = vpack.c.bf16 %v206_v20, %v205_v19 }
  0x56   : > { %1097 = vmatpush3.bf16.xpose.msra.mxu0 %v1096_v38  ;;  %v1146_v26 = vpack.c.bf16 %v238_v22, %v237_v21  ;;  %v189_v27 = vld [vmem:[%s1623_s30 + $0x70] sm:$0xff]  ;;  %v190_v28 = vld [vmem:[%s1623_s30 + $0x78] sm:$0xff] }
  0x57   : > { %1129 = vmatpush3.bf16.xpose.msra.mxu1 %v1128_v39  ;;  %1099 = vmatprep.subr.bf16.mxu0 %v1098_v40  ;;  %v221_v29 = vld [vmem:[%s1623_s30 + $0x170] sm:$0xff]  ;;  %v222_v30 = vld [vmem:[%s1623_s30 + $0x178] sm:$0xff]  ;;  %v1116_v31 = vpack.c.bf16 %v190_v28, %v189_v27  ;;  %v392_v39 = vsub.s32 %v389_v36, %v391_v37 }
  0x58   : > { %1131 = vmatprep.subr.bf16.mxu1 %v1130_v41  ;;  %v1148_v32 = vpack.c.bf16 %v222_v30, %v221_v29 }
  0x5e   : > { %1101 = vmatpush3.bf16.xpose.msra.mxu0 %v1100_v51 }
  0x5f   : > { %1133 = vmatpush3.bf16.xpose.msra.mxu1 %v1132_v52  ;;  %1103 = vmatprep.subr.bf16.mxu0 %v1102_v53 }
  0x60   : > { %1135 = vmatprep.subr.bf16.mxu1 %v1134_v54 }
  0x66   : > { %1105 = vmatpush3.bf16.xpose.msra.mxu0 %v1104_v63 }
  0x67   : > { %1137 = vmatpush3.bf16.xpose.msra.mxu1 %v1136_v0  ;;  %1107 = vmatprep.subr.bf16.mxu0 %v1106_v1 }
  0x68   : > { %1139 = vmatprep.subr.bf16.mxu1 %v1138_v2 }
  0x6e   : > { %1109 = vmatpush3.bf16.xpose.msra.mxu0 %v1108_v11 }
  0x6f   : > { %1141 = vmatpush3.bf16.xpose.msra.mxu1 %v1140_v12  ;;  %1111 = vmatprep.subr.bf16.mxu0 %v1110_v13 }
  0x70   : > { %1143 = vmatprep.subr.bf16.mxu1 %v1142_v14 }
  0x76   : > { %1113 = vmatpush3.bf16.xpose.msra.mxu0 %v1112_v23 }
  0x77   : > { %1145 = vmatpush3.bf16.xpose.msra.mxu1 %v1144_v24  ;;  %1115 = vmatprep.subr.bf16.mxu0 %v1114_v25 }
  0x78   : > { %1147 = vmatprep.subr.bf16.mxu1 %v1146_v26 }
  0x7e   : > { %1117 = vmatpush3.bf16.xpose.msra.mxu0 %v1116_v31 }
  0x7f   : > { %1149 = vmatpush3.bf16.xpose.msra.mxu1 %v1148_v32 }
  0x85   : > { %1051 = vmatmul.mubr.f32.vlgmr.msra.gmra.mrb[0].mxu0 %v1663_v45 }
  0x86   : > { %1085 = vmatmul.mubr.f32.vlgmr.msra.gmra.mrb[0].mxu1 %v1663_v45 }
 0x158   : > { %v305_v38 = vpop.f32.mrb[0].mxu0 }
 0x159   : > { %v376_v40 = vpop.f32.mrb[0].mxu1  ;;  %v307_v41 = vpop.f32.mrb[1].mxu0 }
 0x15a   : > { %v385_v42 = vcombine.low %v305_v38, %v307_v41  ;;  %v378_v43 = vpop.f32.mrb[1].mxu1 }
 0x15b   : > { %v386_v44 = vcombine.low %v376_v40, %v378_v43 }
 0x15c   : > { %v393_v46 = vrot.slane %v385_v42, %v392_v39 }
 0x15d   : > { %v400_v47 = vrot.slane %v386_v44, %v392_v39  ;;  %421 = sbr.rel (!%p1569_p8) target bundleno = 521 (0x209), region = 36 }
 0x15f   : > { %v401_v48 = vcombine.low %v393_v46, %v400_v47 }
 0x161   : > { %v408_v49 = vrot.slane %v401_v48, %v392_v39 }
 0x163   : > { %414 = vst.msk [vmem:[%s1703_s26] sm:$0xf] %vm412_vm0, %v408_v49 }
 0x164   : > { %s2153_s4 = smov (!%p424_p7, %s423_s4), 4 }
 0x165   : > { %s988_s8 = sshll.u32 %s2153_s4, 4 }
 0x166   : > { %p990_p11 = scmp.eq.s32.totalorder %s988_s8, 0 }
 0x167   : > { %p432_p6 = scmp.lt.u32.totalorder (!%p990_p11), %s2153_s4, 8 }
 0x168   : > { %431 = sbr.rel (%p990_p11) target bundleno = 521 (0x209), region = 40 }
 0x16f   : > { %435 = sbr.rel (%p432_p6) target bundleno = 512 (0x200), region = 44  ;;  %s1719_s19 = sand.u32 (!%p432_p6), 7, %s2153_s4  }
 0x170   : > { %p451_p8 = scmp.eq.s32.totalorder (!%p432_p6), %s1719_s19, 0  ;;  %p991_p9 = scmp.ne.s32.totalorder (!%p432_p6), %s1719_s19, 0 }
 0x176   : > { %454 = sbr.rel (%p991_p9) target bundleno = 441 (0x1b9), region = 59  ;;  %s455_s13 = sshrl.u32 (!%p991_p9), %s2153_s4, 3 }
 0x177   : > { %s1726_s9 = sshrl.u32 (!%p991_p9), %s455_s13, 6 }
 0x178   : > { %p992_p10 = scmp.le.s32.totalorder (!%p991_p9), %s1726_s9, 0 }
 0x17d   : > { %898 = sbr.rel (%p992_p10) target bundleno = 421 (0x1a5), region = 146  ;;  %s2136_s15 = smov (!%p992_p10), %s1712_s7 }
 0x17e   : > { %s2137_s16 = smov (!%p992_p10), %s1703_s26  ;;  %s1735_s20 = smov (!%p992_p10), 0  }
 0x17f   : > { %s1737_s21 = smov (!%p992_p10), 0  }
 0x184 LB: >> { %v468_v45 = vld [vmem:[%s1450_s16] sm:$0xff]  ;;  %v470_v50 = vld [vmem:[%s1450_s16 + $0x8] sm:$0xff]  ;;  %v472_v51 = vld [vmem:[%s1450_s16 + $0x10] sm:$0xff]  ;;  %s596_s22 = sadd.s32 1, %s1454_s20  ;;  %s462_s21 = sadd.s32 1, %s1458_s21   ;;  %s1458_s21 = sphi %s1737_s21, %s462_s21   ;;  %s1454_s20 = sphi %s1735_s20, %s2140_s20   ;;  %s1450_s16 = sphi %s2137_s16, %s2139_s16   ;;  %s1446_s15 = sphi %s2136_s15, %s2138_s15  }
 0x185   : >> { %469 = vst [vmem:[%s1446_s15] sm:$0xff] %v468_v45  ;;  %471 = vst [vmem:[%s1446_s15 + $0x8] sm:$0xff] %v470_v50  ;;  %v474_v52 = vld [vmem:[%s1450_s16 + $0x18] sm:$0xff]  ;;  %v476_v53 = vld [vmem:[%s1450_s16 + $0x20] sm:$0xff]  ;;  %p597_p12 = scmp.ge.s32.totalorder %s596_s22, %s1726_s9  ;;  %p461_p13 = scmp.ge.s32.totalorder %s462_s21, %s1726_s9 }
 0x186   : >> { %473 = vst [vmem:[%s1446_s15 + $0x10] sm:$0xff] %v472_v51  ;;  %v478_v54 = vld [vmem:[%s1450_s16 + $0x28] sm:$0xff]  ;;  %475 = vst [vmem:[%s1446_s15 + $0x18] sm:$0xff] %v474_v52  ;;  %v480_v55 = vld [vmem:[%s1450_s16 + $0x30] sm:$0xff] }
 0x187   : >> { %477 = vst [vmem:[%s1446_s15 + $0x20] sm:$0xff] %v476_v53  ;;  %479 = vst [vmem:[%s1446_s15 + $0x28] sm:$0xff] %v478_v54  ;;  %v482_v56 = vld [vmem:[%s1450_s16 + $0x38] sm:$0xff]  ;;  %v484_v57 = vld [vmem:[%s1450_s16 + $0x40] sm:$0xff]  ;;  %s2155_s22 = smov (%p597_p12, %s596_s22), 0 }
 0x188   : >> { %481 = vst [vmem:[%s1446_s15 + $0x30] sm:$0xff] %v480_v55  ;;  %483 = vst [vmem:[%s1446_s15 + $0x38] sm:$0xff] %v482_v56  ;;  %v486_v58 = vld [vmem:[%s1450_s16 + $0x48] sm:$0xff]  ;;  %v488_v59 = vld [vmem:[%s1450_s16 + $0x50] sm:$0xff]  ;;  %s993_s23 = sshll.u32 %s2155_s22, 9  ;;  %s2140_s20 = smov %s2155_s22 }
 0x189   : >> { %485 = vst [vmem:[%s1446_s15 + $0x40] sm:$0xff] %v484_v57  ;;  %v490_v60 = vld [vmem:[%s1450_s16 + $0x58] sm:$0xff]  ;;  %487 = vst [vmem:[%s1446_s15 + $0x48] sm:$0xff] %v486_v58  ;;  %v492_v61 = vld [vmem:[%s1450_s16 + $0x60] sm:$0xff]  ;;  %s1793_s25 = scalar_lea.vmem %s1703_s26, %s993_s23 [#allocation4]   ;;  %s1796_s27 = scalar_lea.vmem %s1712_s7, %s993_s23  }
 0x18a   : >> { %489 = vst [vmem:[%s1446_s15 + $0x50] sm:$0xff] %v488_v59  ;;  %491 = vst [vmem:[%s1446_s15 + $0x58] sm:$0xff] %v490_v60  ;;  %v494_v62 = vld [vmem:[%s1450_s16 + $0x68] sm:$0xff]  ;;  %v496_v63 = vld [vmem:[%s1450_s16 + $0x70] sm:$0xff] }
 0x18b   : >> { %493 = vst [vmem:[%s1446_s15 + $0x60] sm:$0xff] %v492_v61  ;;  %495 = vst [vmem:[%s1446_s15 + $0x68] sm:$0xff] %v494_v62  ;;  %v498_v0 = vld [vmem:[%s1450_s16 + $0x78] sm:$0xff]  ;;  %v500_v1 = vld [vmem:[%s1450_s16 + $0x80] sm:$0xff] }
 0x18c   : >> { %497 = vst [vmem:[%s1446_s15 + $0x70] sm:$0xff] %v496_v63  ;;  %v502_v2 = vld [vmem:[%s1450_s16 + $0x88] sm:$0xff]  ;;  %499 = vst [vmem:[%s1446_s15 + $0x78] sm:$0xff] %v498_v0  ;;  %v504_v3 = vld [vmem:[%s1450_s16 + $0x90] sm:$0xff] }
 0x18d   : >> { %501 = vst [vmem:[%s1446_s15 + $0x80] sm:$0xff] %v500_v1  ;;  %503 = vst [vmem:[%s1446_s15 + $0x88] sm:$0xff] %v502_v2  ;;  %v506_v4 = vld [vmem:[%s1450_s16 + $0x98] sm:$0xff]  ;;  %v508_v5 = vld [vmem:[%s1450_s16 + $0xa0] sm:$0xff] }
 0x18e   : >> { %505 = vst [vmem:[%s1446_s15 + $0x90] sm:$0xff] %v504_v3  ;;  %507 = vst [vmem:[%s1446_s15 + $0x98] sm:$0xff] %v506_v4  ;;  %v510_v6 = vld [vmem:[%s1450_s16 + $0xa8] sm:$0xff]  ;;  %v512_v7 = vld [vmem:[%s1450_s16 + $0xb0] sm:$0xff] }
 0x18f   : >> { %509 = vst [vmem:[%s1446_s15 + $0xa0] sm:$0xff] %v508_v5  ;;  %v514_v8 = vld [vmem:[%s1450_s16 + $0xb8] sm:$0xff]  ;;  %511 = vst [vmem:[%s1446_s15 + $0xa8] sm:$0xff] %v510_v6  ;;  %v516_v9 = vld [vmem:[%s1450_s16 + $0xc0] sm:$0xff] }
 0x190   : >> { %513 = vst [vmem:[%s1446_s15 + $0xb0] sm:$0xff] %v512_v7  ;;  %515 = vst [vmem:[%s1446_s15 + $0xb8] sm:$0xff] %v514_v8  ;;  %v518_v10 = vld [vmem:[%s1450_s16 + $0xc8] sm:$0xff]  ;;  %v520_v11 = vld [vmem:[%s1450_s16 + $0xd0] sm:$0xff] }
 0x191   : >> { %517 = vst [vmem:[%s1446_s15 + $0xc0] sm:$0xff] %v516_v9  ;;  %519 = vst [vmem:[%s1446_s15 + $0xc8] sm:$0xff] %v518_v10  ;;  %v522_v12 = vld [vmem:[%s1450_s16 + $0xd8] sm:$0xff]  ;;  %v524_v13 = vld [vmem:[%s1450_s16 + $0xe0] sm:$0xff] }
 0x192   : >> { %521 = vst [vmem:[%s1446_s15 + $0xd0] sm:$0xff] %v520_v11  ;;  %v526_v14 = vld [vmem:[%s1450_s16 + $0xe8] sm:$0xff]  ;;  %523 = vst [vmem:[%s1446_s15 + $0xd8] sm:$0xff] %v522_v12  ;;  %v528_v15 = vld [vmem:[%s1450_s16 + $0xf0] sm:$0xff] }
 0x193   : >> { %525 = vst [vmem:[%s1446_s15 + $0xe0] sm:$0xff] %v524_v13  ;;  %527 = vst [vmem:[%s1446_s15 + $0xe8] sm:$0xff] %v526_v14  ;;  %v530_v16 = vld [vmem:[%s1450_s16 + $0xf8] sm:$0xff]  ;;  %v532_v17 = vld [vmem:[%s1450_s16 + $0x100] sm:$0xff] }
 0x194   : >> { %529 = vst [vmem:[%s1446_s15 + $0xf0] sm:$0xff] %v528_v15  ;;  %531 = vst [vmem:[%s1446_s15 + $0xf8] sm:$0xff] %v530_v16  ;;  %v534_v18 = vld [vmem:[%s1450_s16 + $0x108] sm:$0xff]  ;;  %v536_v19 = vld [vmem:[%s1450_s16 + $0x110] sm:$0xff] }
 0x195   : >> { %533 = vst [vmem:[%s1446_s15 + $0x100] sm:$0xff] %v532_v17  ;;  %v538_v20 = vld [vmem:[%s1450_s16 + $0x118] sm:$0xff]  ;;  %535 = vst [vmem:[%s1446_s15 + $0x108] sm:$0xff] %v534_v18  ;;  %v540_v21 = vld [vmem:[%s1450_s16 + $0x120] sm:$0xff] }
 0x196   : >> { %537 = vst [vmem:[%s1446_s15 + $0x110] sm:$0xff] %v536_v19  ;;  %539 = vst [vmem:[%s1446_s15 + $0x118] sm:$0xff] %v538_v20  ;;  %v542_v22 = vld [vmem:[%s1450_s16 + $0x128] sm:$0xff]  ;;  %v544_v23 = vld [vmem:[%s1450_s16 + $0x130] sm:$0xff] }
 0x197   : >> { %541 = vst [vmem:[%s1446_s15 + $0x120] sm:$0xff] %v540_v21  ;;  %543 = vst [vmem:[%s1446_s15 + $0x128] sm:$0xff] %v542_v22  ;;  %v546_v24 = vld [vmem:[%s1450_s16 + $0x138] sm:$0xff]  ;;  %v548_v25 = vld [vmem:[%s1450_s16 + $0x140] sm:$0xff] }
 0x198   : >> { %545 = vst [vmem:[%s1446_s15 + $0x130] sm:$0xff] %v544_v23  ;;  %v550_v26 = vld [vmem:[%s1450_s16 + $0x148] sm:$0xff]  ;;  %547 = vst [vmem:[%s1446_s15 + $0x138] sm:$0xff] %v546_v24  ;;  %v552_v27 = vld [vmem:[%s1450_s16 + $0x150] sm:$0xff] }
 0x199   : >> { %549 = vst [vmem:[%s1446_s15 + $0x140] sm:$0xff] %v548_v25  ;;  %551 = vst [vmem:[%s1446_s15 + $0x148] sm:$0xff] %v550_v26  ;;  %v554_v28 = vld [vmem:[%s1450_s16 + $0x158] sm:$0xff]  ;;  %v556_v29 = vld [vmem:[%s1450_s16 + $0x160] sm:$0xff] }
 0x19a   : >> { %553 = vst [vmem:[%s1446_s15 + $0x150] sm:$0xff] %v552_v27  ;;  %555 = vst [vmem:[%s1446_s15 + $0x158] sm:$0xff] %v554_v28  ;;  %v558_v30 = vld [vmem:[%s1450_s16 + $0x168] sm:$0xff]  ;;  %v560_v31 = vld [vmem:[%s1450_s16 + $0x170] sm:$0xff] }
 0x19b   : >> { %557 = vst [vmem:[%s1446_s15 + $0x160] sm:$0xff] %v556_v29  ;;  %v562_v32 = vld [vmem:[%s1450_s16 + $0x178] sm:$0xff]  ;;  %559 = vst [vmem:[%s1446_s15 + $0x168] sm:$0xff] %v558_v30  ;;  %v564_v33 = vld [vmem:[%s1450_s16 + $0x180] sm:$0xff] }
 0x19c   : >> { %561 = vst [vmem:[%s1446_s15 + $0x170] sm:$0xff] %v560_v31  ;;  %563 = vst [vmem:[%s1446_s15 + $0x178] sm:$0xff] %v562_v32  ;;  %v566_v34 = vld [vmem:[%s1450_s16 + $0x188] sm:$0xff]  ;;  %v568_v35 = vld [vmem:[%s1450_s16 + $0x190] sm:$0xff] }
 0x19d   : >> { %565 = vst [vmem:[%s1446_s15 + $0x180] sm:$0xff] %v564_v33  ;;  %567 = vst [vmem:[%s1446_s15 + $0x188] sm:$0xff] %v566_v34  ;;  %v570_v36 = vld [vmem:[%s1450_s16 + $0x198] sm:$0xff]  ;;  %v572_v37 = vld [vmem:[%s1450_s16 + $0x1a0] sm:$0xff] }
 0x19e   : >> { %569 = vst [vmem:[%s1446_s15 + $0x190] sm:$0xff] %v568_v35  ;;  %v574_v38 = vld [vmem:[%s1450_s16 + $0x1a8] sm:$0xff]  ;;  %571 = vst [vmem:[%s1446_s15 + $0x198] sm:$0xff] %v570_v36  ;;  %v576_v39 = vld [vmem:[%s1450_s16 + $0x1b0] sm:$0xff]  ;;  %464 = sbr.rel (!%p461_p13) target bundleno = 388 (0x184), region = 152 }
 0x19f   : >> { %573 = vst [vmem:[%s1446_s15 + $0x1a0] sm:$0xff] %v572_v37  ;;  %575 = vst [vmem:[%s1446_s15 + $0x1a8] sm:$0xff] %v574_v38  ;;  %v578_v40 = vld [vmem:[%s1450_s16 + $0x1b8] sm:$0xff]  ;;  %v580_v41 = vld [vmem:[%s1450_s16 + $0x1c0] sm:$0xff] }
 0x1a0   : >> { %577 = vst [vmem:[%s1446_s15 + $0x1b0] sm:$0xff] %v576_v39  ;;  %579 = vst [vmem:[%s1446_s15 + $0x1b8] sm:$0xff] %v578_v40  ;;  %v582_v42 = vld [vmem:[%s1450_s16 + $0x1c8] sm:$0xff]  ;;  %v584_v43 = vld [vmem:[%s1450_s16 + $0x1d0] sm:$0xff] }
 0x1a1   : >> { %581 = vst [vmem:[%s1446_s15 + $0x1c0] sm:$0xff] %v580_v41  ;;  %v586_v44 = vld [vmem:[%s1450_s16 + $0x1d8] sm:$0xff]  ;;  %583 = vst [vmem:[%s1446_s15 + $0x1c8] sm:$0xff] %v582_v42  ;;  %v588_v46 = vld [vmem:[%s1450_s16 + $0x1e0] sm:$0xff] }
 0x1a2   : >> { %585 = vst [vmem:[%s1446_s15 + $0x1d0] sm:$0xff] %v584_v43  ;;  %587 = vst [vmem:[%s1446_s15 + $0x1d8] sm:$0xff] %v586_v44  ;;  %v590_v47 = vld [vmem:[%s1450_s16 + $0x1e8] sm:$0xff]  ;;  %v592_v48 = vld [vmem:[%s1450_s16 + $0x1f0] sm:$0xff] }
 0x1a3   : >> { %589 = vst [vmem:[%s1446_s15 + $0x1e0] sm:$0xff] %v588_v46  ;;  %591 = vst [vmem:[%s1446_s15 + $0x1e8] sm:$0xff] %v590_v47  ;;  %v594_v49 = vld [vmem:[%s1450_s16 + $0x1f8] sm:$0xff]  ;;  %s2139_s16 = smov %s1793_s25 }
 0x1a4   : >> { %593 = vst [vmem:[%s1446_s15 + $0x1f0] sm:$0xff] %v592_v48  ;;  %595 = vst [vmem:[%s1446_s15 + $0x1f8] sm:$0xff] %v594_v49  ;;  %s2138_s15 = smov %s1796_s27 }
 0x1a5 PF: > { %s1902_s28 = sand.u32 63, %s455_s13   ;;  %s1014_s29 = sshll.u32 %s1726_s9, 13 }
 0x1a6   : > { %s607_s30 = sshra.s32 %s1014_s29, 4  ;;  %p998_p1 = scmp.le.s32.totalorder %s1902_s28, 0 }
 0x1a7   : > { %s608_s12 = scalar_lea.vmem %s1703_s26, %s607_s30 [#allocation4]   ;;  %s611_s18 = scalar_lea.vmem %s1712_s7, %s607_s30  }
 0x1a8   : > { %912 = sbr.rel (%p998_p1) target bundleno = 441 (0x1b9), region = 157  ;;  %s1460_s24 = smov (!%p998_p1), %s611_s18  }
 0x1a9   : > { %s1464_s3 = smov (!%p998_p1), %s608_s12   ;;  %s1468_s5 = smov (!%p998_p1), 0  }
 0x1aa   : > { %s1472_s6 = smov (!%p998_p1), 0  }
 0x1af LB: >> { %v623_v45 = vld [vmem:[%s1466_s3] sm:$0xff]  ;;  %s625_s8 = sadd.s32 1, %s1470_s5  ;;  %s617_s6 = sadd.s32 1, %s1474_s6   ;;  %s1474_s6 = sphi %s1472_s6, %s617_s6   ;;  %s1470_s5 = sphi %s1468_s5, %s1469_s5   ;;  %s1466_s3 = sphi %s1464_s3, %s630_s3   ;;  %s1462_s24 = sphi %s1460_s24, %s631_s24  }
 0x1b0   : >> { %624 = vst [vmem:[%s1462_s24] sm:$0xff] %v623_v45  ;;  %p626_p2 = scmp.ge.s32.totalorder %s625_s8, %s1902_s28  ;;  %p616_p3 = scmp.ge.s32.totalorder %s617_s6, %s1902_s28 }
 0x1b2   : >> { %s2157_s8 = smov (%p626_p2, %s625_s8), 0  ;;  %619 = sbr.rel (!%p616_p3) target bundleno = 431 (0x1af), region = 163 }
 0x1b3   : >> { %s999_s13 = sshll.u32 %s2157_s8, 3  ;;  %s1469_s5 = smov %s2157_s8  }
 0x1b4   : >> { %s630_s3 = scalar_lea.vmem %s608_s12, %s999_s13 [#allocation4]   ;;  %s631_s24 = scalar_lea.vmem %s611_s18, %s999_s13  }
 0x1b9 PF: > { %634 = sbr.rel (%p451_p8) target bundleno = 512 (0x200), region = 77  ;;  %s1914_s9 = ssub.s32 (!%p451_p8), %s2153_s4, %s1719_s19 }
 0x1ba   : > { %s640_s15 = sshrl.u32 (!%p451_p8), %s2153_s4, 3  ;;  %s637_s16 = scalar_lea.vmem (!%p451_p8), %s1703_s26, %s1914_s9 [#allocation4] }
 0x1bb   : > { %s639_s20 = scalar_lea.vmem (!%p451_p8), %s1712_s7, %s1914_s9  ;;  %s1923_s21 = sshrl.u32 (!%p451_p8), %s640_s15, 6 }
 0x1bc   : > { %p1001_p0 = scmp.le.s32.totalorder (!%p451_p8), %s1923_s21, 0 }
 0x1c0   : > { %926 = sbr.rel (%p1001_p0) target bundleno = 488 (0x1e8), region = 168  ;;  %s2141_s22 = smov (!%p1001_p0), %s1712_s7 }
 0x1c1   : > { %s2142_s23 = smov (!%p1001_p0), %s1703_s26  ;;  %s1932_s25 = smov (!%p1001_p0), 0  }
 0x1c2   : > { %s1934_s27 = smov (!%p1001_p0), 0  }
 0x1c7 LB: >> { %v653_v50 = vld [vmem:[%s1482_s23] sm:$0xff]  ;;  %v655_v51 = vld [vmem:[%s1482_s23 + $0x8] sm:$0xff]  ;;  %v657_v52 = vld [vmem:[%s1482_s23 + $0x10] sm:$0xff]  ;;  %s781_s28 = sadd.s32 1, %s1486_s25  ;;  %s647_s27 = sadd.s32 1, %s1490_s27   ;;  %s1490_s27 = sphi %s1934_s27, %s647_s27   ;;  %s1486_s25 = sphi %s1932_s25, %s2145_s25   ;;  %s1482_s23 = sphi %s2142_s23, %s2144_s23   ;;  %s1478_s22 = sphi %s2141_s22, %s2143_s22  }
 0x1c8   : >> { %654 = vst [vmem:[%s1478_s22] sm:$0xff] %v653_v50  ;;  %656 = vst [vmem:[%s1478_s22 + $0x8] sm:$0xff] %v655_v51  ;;  %v659_v53 = vld [vmem:[%s1482_s23 + $0x18] sm:$0xff]  ;;  %v661_v54 = vld [vmem:[%s1482_s23 + $0x20] sm:$0xff]  ;;  %p782_p4 = scmp.ge.s32.totalorder %s781_s28, %s1923_s21  ;;  %p646_p5 = scmp.ge.s32.totalorder %s647_s27, %s1923_s21 }
 0x1c9   : >> { %658 = vst [vmem:[%s1478_s22 + $0x10] sm:$0xff] %v657_v52  ;;  %v663_v55 = vld [vmem:[%s1482_s23 + $0x28] sm:$0xff]  ;;  %660 = vst [vmem:[%s1478_s22 + $0x18] sm:$0xff] %v659_v53  ;;  %v665_v56 = vld [vmem:[%s1482_s23 + $0x30] sm:$0xff] }
 0x1ca   : >> { %662 = vst [vmem:[%s1478_s22 + $0x20] sm:$0xff] %v661_v54  ;;  %664 = vst [vmem:[%s1478_s22 + $0x28] sm:$0xff] %v663_v55  ;;  %v667_v57 = vld [vmem:[%s1482_s23 + $0x38] sm:$0xff]  ;;  %v669_v58 = vld [vmem:[%s1482_s23 + $0x40] sm:$0xff]  ;;  %s2159_s28 = smov (%p782_p4, %s781_s28), 0 }
 0x1cb   : >> { %666 = vst [vmem:[%s1478_s22 + $0x30] sm:$0xff] %v665_v56  ;;  %668 = vst [vmem:[%s1478_s22 + $0x38] sm:$0xff] %v667_v57  ;;  %v671_v59 = vld [vmem:[%s1482_s23 + $0x48] sm:$0xff]  ;;  %v673_v60 = vld [vmem:[%s1482_s23 + $0x50] sm:$0xff]  ;;  %s1002_s29 = sshll.u32 %s2159_s28, 9  ;;  %s2145_s25 = smov %s2159_s28 }
 0x1cc   : >> { %670 = vst [vmem:[%s1478_s22 + $0x40] sm:$0xff] %v669_v58  ;;  %v675_v61 = vld [vmem:[%s1482_s23 + $0x58] sm:$0xff]  ;;  %672 = vst [vmem:[%s1478_s22 + $0x48] sm:$0xff] %v671_v59  ;;  %v677_v62 = vld [vmem:[%s1482_s23 + $0x60] sm:$0xff]  ;;  %s1990_s30 = scalar_lea.vmem %s1703_s26, %s1002_s29 [#allocation4]   ;;  %s1993_s12 = scalar_lea.vmem %s1712_s7, %s1002_s29  }
 0x1cd   : >> { %674 = vst [vmem:[%s1478_s22 + $0x50] sm:$0xff] %v673_v60  ;;  %676 = vst [vmem:[%s1478_s22 + $0x58] sm:$0xff] %v675_v61  ;;  %v679_v63 = vld [vmem:[%s1482_s23 + $0x68] sm:$0xff]  ;;  %v681_v0 = vld [vmem:[%s1482_s23 + $0x70] sm:$0xff] }
 0x1ce   : >> { %678 = vst [vmem:[%s1478_s22 + $0x60] sm:$0xff] %v677_v62  ;;  %680 = vst [vmem:[%s1478_s22 + $0x68] sm:$0xff] %v679_v63  ;;  %v683_v1 = vld [vmem:[%s1482_s23 + $0x78] sm:$0xff]  ;;  %v685_v2 = vld [vmem:[%s1482_s23 + $0x80] sm:$0xff] }
 0x1cf   : >> { %682 = vst [vmem:[%s1478_s22 + $0x70] sm:$0xff] %v681_v0  ;;  %v687_v3 = vld [vmem:[%s1482_s23 + $0x88] sm:$0xff]  ;;  %684 = vst [vmem:[%s1478_s22 + $0x78] sm:$0xff] %v683_v1  ;;  %v689_v4 = vld [vmem:[%s1482_s23 + $0x90] sm:$0xff] }
 0x1d0   : >> { %686 = vst [vmem:[%s1478_s22 + $0x80] sm:$0xff] %v685_v2  ;;  %688 = vst [vmem:[%s1478_s22 + $0x88] sm:$0xff] %v687_v3  ;;  %v691_v5 = vld [vmem:[%s1482_s23 + $0x98] sm:$0xff]  ;;  %v693_v6 = vld [vmem:[%s1482_s23 + $0xa0] sm:$0xff] }
 0x1d1   : >> { %690 = vst [vmem:[%s1478_s22 + $0x90] sm:$0xff] %v689_v4  ;;  %692 = vst [vmem:[%s1478_s22 + $0x98] sm:$0xff] %v691_v5  ;;  %v695_v7 = vld [vmem:[%s1482_s23 + $0xa8] sm:$0xff]  ;;  %v697_v8 = vld [vmem:[%s1482_s23 + $0xb0] sm:$0xff] }
 0x1d2   : >> { %694 = vst [vmem:[%s1478_s22 + $0xa0] sm:$0xff] %v693_v6  ;;  %v699_v9 = vld [vmem:[%s1482_s23 + $0xb8] sm:$0xff]  ;;  %696 = vst [vmem:[%s1478_s22 + $0xa8] sm:$0xff] %v695_v7  ;;  %v701_v10 = vld [vmem:[%s1482_s23 + $0xc0] sm:$0xff] }
 0x1d3   : >> { %698 = vst [vmem:[%s1478_s22 + $0xb0] sm:$0xff] %v697_v8  ;;  %700 = vst [vmem:[%s1478_s22 + $0xb8] sm:$0xff] %v699_v9  ;;  %v703_v11 = vld [vmem:[%s1482_s23 + $0xc8] sm:$0xff]  ;;  %v705_v12 = vld [vmem:[%s1482_s23 + $0xd0] sm:$0xff] }
 0x1d4   : >> { %702 = vst [vmem:[%s1478_s22 + $0xc0] sm:$0xff] %v701_v10  ;;  %704 = vst [vmem:[%s1478_s22 + $0xc8] sm:$0xff] %v703_v11  ;;  %v707_v13 = vld [vmem:[%s1482_s23 + $0xd8] sm:$0xff]  ;;  %v709_v14 = vld [vmem:[%s1482_s23 + $0xe0] sm:$0xff] }
 0x1d5   : >> { %706 = vst [vmem:[%s1478_s22 + $0xd0] sm:$0xff] %v705_v12  ;;  %v711_v15 = vld [vmem:[%s1482_s23 + $0xe8] sm:$0xff]  ;;  %708 = vst [vmem:[%s1478_s22 + $0xd8] sm:$0xff] %v707_v13  ;;  %v713_v16 = vld [vmem:[%s1482_s23 + $0xf0] sm:$0xff] }
 0x1d6   : >> { %710 = vst [vmem:[%s1478_s22 + $0xe0] sm:$0xff] %v709_v14  ;;  %712 = vst [vmem:[%s1478_s22 + $0xe8] sm:$0xff] %v711_v15  ;;  %v715_v17 = vld [vmem:[%s1482_s23 + $0xf8] sm:$0xff]  ;;  %v717_v18 = vld [vmem:[%s1482_s23 + $0x100] sm:$0xff] }
 0x1d7   : >> { %714 = vst [vmem:[%s1478_s22 + $0xf0] sm:$0xff] %v713_v16  ;;  %716 = vst [vmem:[%s1478_s22 + $0xf8] sm:$0xff] %v715_v17  ;;  %v719_v19 = vld [vmem:[%s1482_s23 + $0x108] sm:$0xff]  ;;  %v721_v20 = vld [vmem:[%s1482_s23 + $0x110] sm:$0xff] }
 0x1d8   : >> { %718 = vst [vmem:[%s1478_s22 + $0x100] sm:$0xff] %v717_v18  ;;  %v723_v21 = vld [vmem:[%s1482_s23 + $0x118] sm:$0xff]  ;;  %720 = vst [vmem:[%s1478_s22 + $0x108] sm:$0xff] %v719_v19  ;;  %v725_v22 = vld [vmem:[%s1482_s23 + $0x120] sm:$0xff] }
 0x1d9   : >> { %722 = vst [vmem:[%s1478_s22 + $0x110] sm:$0xff] %v721_v20  ;;  %724 = vst [vmem:[%s1478_s22 + $0x118] sm:$0xff] %v723_v21  ;;  %v727_v23 = vld [vmem:[%s1482_s23 + $0x128] sm:$0xff]  ;;  %v729_v24 = vld [vmem:[%s1482_s23 + $0x130] sm:$0xff] }
 0x1da   : >> { %726 = vst [vmem:[%s1478_s22 + $0x120] sm:$0xff] %v725_v22  ;;  %728 = vst [vmem:[%s1478_s22 + $0x128] sm:$0xff] %v727_v23  ;;  %v731_v25 = vld [vmem:[%s1482_s23 + $0x138] sm:$0xff]  ;;  %v733_v26 = vld [vmem:[%s1482_s23 + $0x140] sm:$0xff] }
 0x1db   : >> { %730 = vst [vmem:[%s1478_s22 + $0x130] sm:$0xff] %v729_v24  ;;  %v735_v27 = vld [vmem:[%s1482_s23 + $0x148] sm:$0xff]  ;;  %732 = vst [vmem:[%s1478_s22 + $0x138] sm:$0xff] %v731_v25  ;;  %v737_v28 = vld [vmem:[%s1482_s23 + $0x150] sm:$0xff] }
 0x1dc   : >> { %734 = vst [vmem:[%s1478_s22 + $0x140] sm:$0xff] %v733_v26  ;;  %736 = vst [vmem:[%s1478_s22 + $0x148] sm:$0xff] %v735_v27  ;;  %v739_v29 = vld [vmem:[%s1482_s23 + $0x158] sm:$0xff]  ;;  %v741_v30 = vld [vmem:[%s1482_s23 + $0x160] sm:$0xff] }
 0x1dd   : >> { %738 = vst [vmem:[%s1478_s22 + $0x150] sm:$0xff] %v737_v28  ;;  %740 = vst [vmem:[%s1478_s22 + $0x158] sm:$0xff] %v739_v29  ;;  %v743_v31 = vld [vmem:[%s1482_s23 + $0x168] sm:$0xff]  ;;  %v745_v32 = vld [vmem:[%s1482_s23 + $0x170] sm:$0xff] }
 0x1de   : >> { %742 = vst [vmem:[%s1478_s22 + $0x160] sm:$0xff] %v741_v30  ;;  %v747_v33 = vld [vmem:[%s1482_s23 + $0x178] sm:$0xff]  ;;  %744 = vst [vmem:[%s1478_s22 + $0x168] sm:$0xff] %v743_v31  ;;  %v749_v34 = vld [vmem:[%s1482_s23 + $0x180] sm:$0xff] }
 0x1df   : >> { %746 = vst [vmem:[%s1478_s22 + $0x170] sm:$0xff] %v745_v32  ;;  %748 = vst [vmem:[%s1478_s22 + $0x178] sm:$0xff] %v747_v33  ;;  %v751_v35 = vld [vmem:[%s1482_s23 + $0x188] sm:$0xff]  ;;  %v753_v36 = vld [vmem:[%s1482_s23 + $0x190] sm:$0xff] }
 0x1e0   : >> { %750 = vst [vmem:[%s1478_s22 + $0x180] sm:$0xff] %v749_v34  ;;  %752 = vst [vmem:[%s1478_s22 + $0x188] sm:$0xff] %v751_v35  ;;  %v755_v37 = vld [vmem:[%s1482_s23 + $0x198] sm:$0xff]  ;;  %v757_v38 = vld [vmem:[%s1482_s23 + $0x1a0] sm:$0xff] }
 0x1e1   : >> { %754 = vst [vmem:[%s1478_s22 + $0x190] sm:$0xff] %v753_v36  ;;  %v759_v39 = vld [vmem:[%s1482_s23 + $0x1a8] sm:$0xff]  ;;  %756 = vst [vmem:[%s1478_s22 + $0x198] sm:$0xff] %v755_v37  ;;  %v761_v40 = vld [vmem:[%s1482_s23 + $0x1b0] sm:$0xff]  ;;  %649 = sbr.rel (!%p646_p5) target bundleno = 455 (0x1c7), region = 174 }
 0x1e2   : >> { %758 = vst [vmem:[%s1478_s22 + $0x1a0] sm:$0xff] %v757_v38  ;;  %760 = vst [vmem:[%s1478_s22 + $0x1a8] sm:$0xff] %v759_v39  ;;  %v763_v41 = vld [vmem:[%s1482_s23 + $0x1b8] sm:$0xff]  ;;  %v765_v42 = vld [vmem:[%s1482_s23 + $0x1c0] sm:$0xff] }
 0x1e3   : >> { %762 = vst [vmem:[%s1478_s22 + $0x1b0] sm:$0xff] %v761_v40  ;;  %764 = vst [vmem:[%s1478_s22 + $0x1b8] sm:$0xff] %v763_v41  ;;  %v767_v43 = vld [vmem:[%s1482_s23 + $0x1c8] sm:$0xff]  ;;  %v769_v44 = vld [vmem:[%s1482_s23 + $0x1d0] sm:$0xff] }
 0x1e4   : >> { %766 = vst [vmem:[%s1478_s22 + $0x1c0] sm:$0xff] %v765_v42  ;;  %v771_v46 = vld [vmem:[%s1482_s23 + $0x1d8] sm:$0xff]  ;;  %768 = vst [vmem:[%s1478_s22 + $0x1c8] sm:$0xff] %v767_v43  ;;  %v773_v47 = vld [vmem:[%s1482_s23 + $0x1e0] sm:$0xff] }
 0x1e5   : >> { %770 = vst [vmem:[%s1478_s22 + $0x1d0] sm:$0xff] %v769_v44  ;;  %772 = vst [vmem:[%s1478_s22 + $0x1d8] sm:$0xff] %v771_v46  ;;  %v775_v48 = vld [vmem:[%s1482_s23 + $0x1e8] sm:$0xff]  ;;  %v777_v49 = vld [vmem:[%s1482_s23 + $0x1f0] sm:$0xff] }
 0x1e6   : >> { %774 = vst [vmem:[%s1478_s22 + $0x1e0] sm:$0xff] %v773_v47  ;;  %776 = vst [vmem:[%s1478_s22 + $0x1e8] sm:$0xff] %v775_v48  ;;  %v779_v45 = vld [vmem:[%s1482_s23 + $0x1f8] sm:$0xff]  ;;  %s2144_s23 = smov %s1990_s30 }
 0x1e7   : >> { %778 = vst [vmem:[%s1478_s22 + $0x1f0] sm:$0xff] %v777_v49  ;;  %780 = vst [vmem:[%s1478_s22 + $0x1f8] sm:$0xff] %v779_v45  ;;  %s2143_s22 = smov %s1993_s12 }
 0x1e8 PF: > { %s2099_s18 = sand.u32 63, %s640_s15   ;;  %s1016_s24 = sshll.u32 %s1923_s21, 13 }
 0x1e9   : > { %s792_s3 = sshra.s32 %s1016_s24, 4  ;;  %p1007_p7 = scmp.le.s32.totalorder %s2099_s18, 0 }
 0x1ea   : > { %s793_s5 = scalar_lea.vmem %s1703_s26, %s792_s3 [#allocation4]   ;;  %s796_s6 = scalar_lea.vmem %s1712_s7, %s792_s3  }
 0x1eb   : > { %940 = sbr.rel (%p1007_p7) target bundleno = 508 (0x1fc), region = 179  ;;  %s1492_s8 = smov (!%p1007_p7), %s796_s6  }
 0x1ec   : > { %s1496_s13 = smov (!%p1007_p7), %s793_s5   ;;  %s1500_s28 = smov (!%p1007_p7), 0  }
 0x1ed   : > { %s1504_s27 = smov (!%p1007_p7), 0  }
 0x1f2 LB: >> { %v808_v50 = vld [vmem:[%s1498_s13] sm:$0xff]  ;;  %s810_s15 = sadd.s32 1, %s1502_s28  ;;  %s802_s27 = sadd.s32 1, %s1506_s27   ;;  %s1506_s27 = sphi %s1504_s27, %s802_s27   ;;  %s1502_s28 = sphi %s1500_s28, %s1501_s28   ;;  %s1498_s13 = sphi %s1496_s13, %s815_s13   ;;  %s1494_s8 = sphi %s1492_s8, %s816_s8  }
 0x1f3   : >> { %809 = vst [vmem:[%s1494_s8] sm:$0xff] %v808_v50  ;;  %p811_p11 = scmp.ge.s32.totalorder %s810_s15, %s2099_s18  ;;  %p801_p6 = scmp.ge.s32.totalorder %s802_s27, %s2099_s18 }
 0x1f5   : >> { %s2161_s15 = smov (%p811_p11, %s810_s15), 0  ;;  %804 = sbr.rel (!%p801_p6) target bundleno = 498 (0x1f2), region = 185 }
 0x1f6   : >> { %s1008_s21 = sshll.u32 %s2161_s15, 3  ;;  %s1501_s28 = smov %s2161_s15  }
 0x1f7   : >> { %s815_s13 = scalar_lea.vmem %s793_s5, %s1008_s21 [#allocation4]   ;;  %s816_s8 = scalar_lea.vmem %s796_s6, %s1008_s21  }
 0x1fc PF: > { %s1512_s22 = smov 0  }
 0x1fd   : > { %s817_s23 = sshllo.u32 %s1512_s22, %s1719_s19 }
 0x1fe   : > { %v826_v51 = vld [vmem:[%s637_s16] sm:%s817_s23] }
 0x1ff   : > { %827 = vst [vmem:[%s639_s20] sm:%s817_s23] %v826_v51 }
 0x200 PF: > { %p1010_p8 = scmp.ge.u32.totalorder %s2153_s4, 8 }
 0x201   : > { %s1513_s25 = smov (!%p1010_p8), 0  }
 0x202   : > { %438 = sbr.rel (%p1010_p8) target bundleno = 521 (0x209), region = 48  ;;  %s439_s29 = sshllo.u32 (!%p1010_p8), %s1513_s25, %s2153_s4 }
 0x203   : > { %v448_v52 = vld [vmem:[%s1703_s26] sm:%s439_s29] (!%p1010_p8) }
 0x204   : > { %449 = vst [vmem:[%s1712_s7] sm:%s439_s29] (!%p1010_p8), %v448_v52 }
 0x209 PF: > { %p12_p9 = scmp.ge.s32.totalorder %s1551_s14, 4   ;;  %s2146_s9 = smov %s1434_s10 }
 0x20a   : > { %s2147_s10 = smov %s1438_s11  ;;  %s2148_s11 = smov %s1561_s17 }
 0x20b   : > { %s2149_s12 = smov %s1551_s14  ;;  %14 = sbr.rel (!%p12_p9) target bundleno = 3 (0x3), region = 196 }
 0x212   :  { %841 = vsyncpa [#allocation3], 1 }
 0x213   :  { %843 = vsyncpa [#allocation3 + $0x1], 1 }

</bundles_post_ra>
